<compile_context>
chip_gen: v5e
topology: v5e:2x2
jax: 0.10.0
libtpu: 0.0.40
codegen_flags: <defaults>
</compile_context>

<pallas_src>
import jax
import jax.numpy as jnp
from jax.experimental import pallas as pl
from jax.experimental.pallas import tpu as pltpu

_COLS = 512                 # lane-dense column width (multiple of 128) -> wide unmasked vst
_MAX_BLOCK_ROWS = 2048      # 2048 x 512 f32 = 4 MiB per block
_PALLAS_MIN_ELEMS = 65536   # below this, a plain fused jnp op beats any kernel launch


def _round_up(a, m):
    return ((a + m - 1) // m) * m


def _affine_kernel(w_ref, b_ref, x_ref, o_ref):
    # w_ref, b_ref: (1,) f32 scalars in SMEM.
    # x_ref, o_ref: (block_rows, _COLS) lane-dense tiles in VMEM.
    w = w_ref[0]
    b = b_ref[0]
    xv = x_ref[...].astype(jnp.float32)
    o_ref[...] = (xv * w + b).astype(o_ref.dtype)   # pure VPU FMA, no MXU push/drain


def linear_forward(x, weight, bias, *, force_pallas=False):
    """y = x @ weight.T + bias, matching torch.nn.Linear(1, 1). x: (N, 1)."""
    n, in_f = x.shape
    out_f, in_f2 = weight.shape
    assert in_f == 1 and in_f2 == 1 and out_f == 1, "kernel specialised to Linear(1, 1)"

    out_dtype = jnp.result_type(x.dtype, weight.dtype, bias.dtype)
    w_s = weight.reshape(1).astype(jnp.float32)     # (1,) scalar weight
    b_s = bias.reshape(1).astype(jnp.float32)       # (1,) scalar bias

    # Small-N fast path: launch / pad / slice overheads dwarf the work.
    if n < _PALLAS_MIN_ELEMS and not force_pallas:
        y = x.astype(jnp.float32) * w_s[0] + b_s[0]
        return y.astype(out_dtype).reshape(n, out_f)

    x_flat = x.reshape(-1)                          # free view; stream x in its own dtype

    # Lane-dense 2-D view (rows, _COLS). Only pad when N is not already a
    # multiple of _COLS; for the aligned case the reshape is a free view.
    padded = _round_up(n, _COLS)
    rows = padded // _COLS

    # Row tiling: ~4 MiB blocks, and >= 2 blocks whenever possible so both
    # v7x TensorCores get a share (dimension_semantics="parallel").
    if rows <= 16:
        block_rows = rows                           # single block == full array dims
    else:
        block_rows = min(_MAX_BLOCK_ROWS, _round_up(pl.cdiv(rows, 2), 8))
    grid = (pl.cdiv(rows, block_rows),)             # partial last block handled by Pallas

    if padded != n:
        # TODO(synk): with allow_input_fusion the tail pad could be fused into
        # the pallas input DMA and avoid this extra pass over x.
        x_flat = jnp.pad(x_flat, (0, padded - n))
    x2d = x_flat.reshape(rows, _COLS)

    y2d = pl.pallas_call(
        _affine_kernel,
        out_shape=jax.ShapeDtypeStruct((rows, _COLS), out_dtype),
        grid=grid,
        in_specs=[
            pl.BlockSpec(memory_space=pltpu.MemorySpace.SMEM),      # weight scalar
            pl.BlockSpec(memory_space=pltpu.MemorySpace.SMEM),      # bias scalar
            pl.BlockSpec((block_rows, _COLS), lambda i: (i, 0)),    # x tile
        ],
        out_specs=pl.BlockSpec((block_rows, _COLS), lambda i: (i, 0)),
        compiler_params=pltpu.CompilerParams(
            dimension_semantics=("parallel",),       # shard row tiles across TCs (v7x)
            vmem_limit_bytes=32 * 1024 * 1024,       # in+out double-buffered ~16 MiB
        ),
    )(w_s, b_s, x2d)

    y_flat = y2d.reshape(-1)
    if padded != n:
        y_flat = y_flat[:n]
    return y_flat.reshape(n, out_f)


if __name__ == "__main__":
    key = jax.random.PRNGKey(0)
    k_x, k_w, k_b = jax.random.split(key, 3)

    # Deterministic parameter init (nn.Linear(1,1)-style)
    weight = jax.random.uniform(k_w, (1, 1), jnp.float32, minval=-1.0, maxval=1.0)
    bias = jax.random.uniform(k_b, (1,), jnp.float32, minval=-1.0, maxval=1.0)

    def ref(x):
        return x @ weight.T + bias

    # 1) Small batch (fast path): shape (8, 1) as the module implies.
    x_small = jax.random.normal(k_x, (8, 1), jnp.float32)
    y_small = linear_forward(x_small, weight, bias)
    jax.block_until_ready(y_small)
    assert y_small.shape == (8, 1)
    assert jnp.allclose(y_small, ref(x_small), atol=1e-6), "mismatch (N=8)"

    # 2) Ragged N, Pallas path forced: exercises tail pad + slice + single block.
    x_rag = jax.random.normal(k_x, (300, 1), jnp.float32)
    y_rag = linear_forward(x_rag, weight, bias, force_pallas=True)
    jax.block_until_ready(y_rag)
    assert y_rag.shape == (300, 1)
    assert jnp.allclose(y_rag, ref(x_rag), atol=1e-6), "mismatch (N=300)"

    # 3) Aligned larger N: no pad / no slice, 2-block grid (megacore split).
    x_big = jax.random.normal(k_x, (131072, 1), jnp.float32)
    y_big = linear_forward(x_big, weight, bias)
    jax.block_until_ready(y_big)
    assert y_big.shape == (131072, 1)
    assert jnp.allclose(y_big, ref(x_big), atol=1e-6), "mismatch (N=131072)"

    # 4) Ragged larger N: pad path + partial last row-block at the grid edge.
    x_big2 = jax.random.normal(k_x, (70000, 1), jnp.float32)
    y_big2 = linear_forward(x_big2, weight, bias)
    jax.block_until_ready(y_big2)
    assert y_big2.shape == (70000, 1)
    assert jnp.allclose(y_big2, ref(x_big2), atol=1e-6), "mismatch (N=70000)"

    print("KERNEL_OK")
</pallas_src>

<mosaic_0001>
module attributes {stable_mosaic.version = 11 : i64} {
  func.func @_affine_kernel(%arg0: i32, %arg1: memref<1xf32, #tpu.memory_space<smem>>, %arg2: memref<1xf32, #tpu.memory_space<smem>>, %arg3: memref<1x512xf32, #tpu.memory_space<vmem>>, %arg4: memref<1x512xf32, #tpu.memory_space<vmem>>) attributes {dimension_semantics = [#tpu.dimension_semantics<parallel>], iteration_bounds = array<i64: 1>, scalar_prefetch = 0 : i64, scratch_operands = 0 : i64, tpu.core_type = #tpu.core_type<tc>, window_params = [{transform_indices = @transform_0, window_bounds = array<i64: 1>}, {transform_indices = @transform_1, window_bounds = array<i64: 1>}, {transform_indices = @transform_2, window_bounds = array<i64: 1, 512>}, {transform_indices = @transform_3, window_bounds = array<i64: 1, 512>}]} {
    %c0 = arith.constant 0 : index
    %0 = memref.load %arg1[%c0] : memref<1xf32, #tpu.memory_space<smem>>
    %c0_0 = arith.constant 0 : index
    %1 = memref.load %arg2[%c0_0] : memref<1xf32, #tpu.memory_space<smem>>
    %c0_1 = arith.constant 0 : index
    %c0_2 = arith.constant 0 : index
    %2 = vector.load %arg3[%c0_1, %c0_2] : memref<1x512xf32, #tpu.memory_space<vmem>>, vector<1x512xf32>
    %3 = vector.broadcast %0 : f32 to vector<1x512xf32>
    %4 = arith.mulf %2, %3 : vector<1x512xf32>
    %5 = vector.broadcast %1 : f32 to vector<1x512xf32>
    %6 = arith.addf %4, %5 : vector<1x512xf32>
    %c0_3 = arith.constant 0 : index
    %c0_4 = arith.constant 0 : index
    %7 = vector.load %arg4[%c0_3, %c0_4] : memref<1x512xf32, #tpu.memory_space<vmem>>, vector<1x512xf32>
    tpu.vector_store %arg4[%c0_3, %c0_4], %6 {strides = array<i32>} : memref<1x512xf32, #tpu.memory_space<vmem>>, vector<1x512xf32>,
    return
  }
  func.func @transform_0(%arg0: i32) -> i32 {
    %c0_i32 = arith.constant 0 : i32
    %c0_i32_0 = arith.constant 0 : i32
    return %c0_i32 : i32
  }
  func.func @transform_1(%arg0: i32) -> i32 {
    %c0_i32 = arith.constant 0 : i32
    %c0_i32_0 = arith.constant 0 : i32
    return %c0_i32 : i32
  }
  func.func @transform_2(%arg0: i32) -> (i32, i32) {
    %c0_i32 = arith.constant 0 : i32
    %c0_i32_0 = arith.constant 0 : i32
    return %arg0, %c0_i32 : i32, i32
  }
  func.func @transform_3(%arg0: i32) -> (i32, i32) {
    %c0_i32 = arith.constant 0 : i32
    %c0_i32_0 = arith.constant 0 : i32
    return %arg0, %c0_i32 : i32, i32
  }
}

</mosaic_0001>

<bundles_post_ra>
// kernel: tpu_custom_call.1
= control target key start
LH: loop header
LB: loop body
LE: loop exit
PB: predicated region body
PF: predicated region fallthrough
CT: control target
= control target key end

     0   :  { %v24_v3 = vlaneseq  ;;  %s105_s0 = inlined_call_operand.<no memory space> [shape: f32[1], index: 0, kind: input, shape index: {}]   ;;  %s106_s1 = inlined_call_operand.<no memory space> [shape: f32[1], index: 1, kind: input, shape index: {}]   ;;  %s107_s2 = inlined_call_operand.vmem [shape: f32[1,512], index: 2, kind: input, shape index: {}]   ;;  %s108_s3 = inlined_call_operand.hbm [shape: f32[1,512], index: 3, kind: output, shape index: {}]  }
   0x1   :  { %v19_v0 = vld [vmem:[%s107_s2] sm:$0xf]  ;;  %v20_v1 = vstv %s105_s0  ;;  %v22_v2 = vstv %s106_s1 }
   0x2   :  { %10 = vsyncpa [#allocation5], 0  ;;  %s36_s20 = sshll.u32 %s108_s3, 4  ;;  %v21_v4 = vmul.f32 %v20_v1, %v19_v0  ;;  %s72_s21 = smov [#allocation4]   ;;  %vm26_vm0 = vcmp.lt.s32.totalorder %v24_v3, 512  ;;  %s37_s20 = int_to_ptr.hbm [resolvable:$true] %s36_s20 }
   0x3   :  { %s34_s22 = sshll.u32 %s72_s21, 4  ;;  %s35_s22 = int_to_ptr.vmem [resolvable:$true] %s34_s22 }
   0x4   :  { %v23_v5 = vadd.f32 %v22_v2, %v21_v4 }
   0x6   :  { %28 = vst.msk [vmem:[#allocation4] sm:$0xf] %vm26_vm0, %v23_v5 }
   0x7   :  { %39 = dma.vmem_to_hbm [thread:$0]  %s35_s22, 64, %s37_s20, [#allocation5]  }
   0x8   :  { %70 = dma.done.wait [#allocation5], 64  }
   0x9   :  { %71 = vsyncadd [#allocation5], 4294967232 }
   0xa   :  { %44 = vsyncpa [#allocation5], 1 }

</bundles_post_ra>
